<compile_context>
chip_gen: v5e
topology: v5e:2x2
jax: 0.10.0
libtpu: 0.0.40
codegen_flags: <defaults>
</compile_context>

<pallas_src>
import functools

import jax
import jax.numpy as jnp
from jax.experimental import pallas as pl
from jax.experimental.pallas import tpu as pltpu

KSIZE = 5
PAD = KSIZE // 2
NR_HEADS = 4
HEAD_DIM = 64

_CPARAMS = pltpu.CompilerParams(
    dimension_semantics=("parallel",),          # batch axis -> both cores on v7x
    vmem_limit_bytes=32 * 1024 * 1024,
)


def _full_spec(shape):
    """Whole-array block (weights / small params), constant across the grid."""
    nd = len(shape)
    return pl.BlockSpec(shape, lambda b, _nd=nd: (0,) * _nd)


# --------------------------------------------------------------------------
# Fused EncoderPre: 3 x (Conv1d k=5 'same' + folded BN + ReLU) + Linear+ReLU
#                   + pos_alpha * pos_emb       — one pallas_call, grid=(B,)
# --------------------------------------------------------------------------
def pre_net_kernel(xp_ref, w1_ref, s1_ref, t1_ref,
                   w2_ref, s2_ref, t2_ref,
                   w3_ref, s3_ref, t3_ref,
                   lw_ref, lb_ref, alpha_ref, pos_ref, o_ref):
    # xp_ref : (T + 2*PAD, Cin)   zero-padded input for this batch element
    # wN_ref : (KSIZE*CinN, E)    im2col conv weights (bf16)
    # sN/tN  : (1, E)             folded BN scale / shift (f32)
    # lw_ref : (E, E) bf16, lb_ref: (1, E) f32
    # alpha_ref: (1, 1) f32, pos_ref: (T, E) f32, o_ref: (T, E) f32
    T = o_ref.shape[0]

    def conv_bn_relu(xp16, w_ref, s_ref, t_ref):
        # im2col: 5 shifted slices concatenated on the contraction (lane) axis,
        # one well-filled MXU matmul instead of 5 tiny K=Cin ones.
        cols = jnp.concatenate([xp16[k:k + T, :] for k in range(KSIZE)],
                               axis=-1)
        y = jnp.dot(cols, w_ref[...], preferred_element_type=jnp.float32)
        y = y * s_ref[...] + t_ref[...]          # folded BN (+conv bias) in f32
        return jnp.maximum(y, 0.0)

    def pad_t(h):
        # 'same' padding of 2 rows on each side for the next conv layer.
        z = jnp.zeros((PAD, h.shape[1]), jnp.bfloat16)
        return jnp.concatenate([z, h.astype(jnp.bfloat16), z], axis=0)

    h = conv_bn_relu(xp_ref[...].astype(jnp.bfloat16), w1_ref, s1_ref, t1_ref)
    h = conv_bn_relu(pad_t(h), w2_ref, s2_ref, t2_ref)
    h = conv_bn_relu(pad_t(h), w3_ref, s3_ref, t3_ref)

    y = jnp.dot(h.astype(jnp.bfloat16), lw_ref[...],
                preferred_element_type=jnp.float32) + lb_ref[...]
    y = jnp.maximum(y, 0.0)
    o_ref[...] = y + alpha_ref[...] * pos_ref[...]


def pre_net_forward(x, pos_emb, params):
    B, T, Cin = x.shape
    E = pos_emb.shape[-1]
    Tp = T + 2 * PAD
    xp = jnp.pad(x, ((0, 0), (PAD, PAD), (0, 0)))  # glue: 'same' padding

    c1, c2, c3 = params["pre_convs"]
    args = (xp,
            c1["w"], c1["scale"], c1["shift"],
            c2["w"], c2["scale"], c2["shift"],
            c3["w"], c3["scale"], c3["shift"],
            params["lin_w"], params["lin_b"], params["pos_alpha"], pos_emb)

    in_specs = [pl.BlockSpec((None, Tp, Cin), lambda b: (b, 0, 0))]
    in_specs += [_full_spec(a.shape) for a in args[1:-1]]
    in_specs += [pl.BlockSpec((None, T, E), lambda b: (b, 0, 0))]

    return pl.pallas_call(
        pre_net_kernel,
        out_shape=jax.ShapeDtypeStruct((B, T, E), jnp.float32),
        grid_spec=pltpu.PrefetchScalarGridSpec(
            num_scalar_prefetch=0,
            grid=(B,),
            in_specs=in_specs,
            out_specs=pl.BlockSpec((None, T, E), lambda b: (b, 0, 0)),
        ),
        compiler_params=_CPARAMS,
    )(*args)


# --------------------------------------------------------------------------
# EncoderBlock: fused QKV proj -> batched multi-head masked attention
#               -> single output proj -> residual.  grid=(B,)
# --------------------------------------------------------------------------
def encoder_block_kernel(x_ref, bias_ref, wqkv_ref, bqkv_ref, wo_ref, bo_ref,
                         y_ref, att_ref, *, nr_heads, head_dim):
    # x_ref   : (T, E) f32        bias_ref: (1, T) additive key-padding bias
    # wqkv_ref: (E, 3*H*hd) bf16  bqkv_ref: (1, 3*H*hd) f32
    # wo_ref  : (H*hd, E) bf16    bo_ref  : (1, E) f32
    # y_ref   : (T, E) f32        att_ref : (H, T, T) f32
    T, _ = x_ref.shape
    H, hd = nr_heads, head_dim
    qdim = H * hd
    scale = 1.0 / (float(head_dim) ** 0.5)

    xb = x_ref[...]                                                # (T, E) f32

    # Fused QKV projection: one K=E, N=3*H*hd matmul.
    qkv = jnp.dot(xb.astype(jnp.bfloat16), wqkv_ref[...],
                  preferred_element_type=jnp.float32) + bqkv_ref[...]
    q16 = qkv[:, 0 * qdim:1 * qdim].astype(jnp.bfloat16)           # (T, H*hd)
    k16 = qkv[:, 1 * qdim:2 * qdim].astype(jnp.bfloat16)
    v16 = qkv[:, 2 * qdim:3 * qdim].astype(jnp.bfloat16)

    # Batch the heads: (H, T, hd) operands, single batched score/context dots.
    qh = jnp.stack([q16[:, h * hd:(h + 1) * hd] for h in range(H)], axis=0)
    kh = jnp.stack([k16[:, h * hd:(h + 1) * hd] for h in range(H)], axis=0)
    vh = jnp.stack([v16[:, h * hd:(h + 1) * hd] for h in range(H)], axis=0)

    s = jnp.einsum("htd,hsd->hts", qh, kh,
                   preferred_element_type=jnp.float32) * scale      # (H, T, T)
    s = s + bias_ref[...]                         # key mask (broadcast over q)

    m = jnp.max(s, axis=-1, keepdims=True)
    p = jnp.exp(s - m)
    l = jnp.sum(p, axis=-1, keepdims=True)
    att = p * pl.reciprocal(l, approx=True)       # EUP divide, ~free
    att_ref[...] = att

    ctx = jnp.einsum("hts,hsd->htd", att.astype(jnp.bfloat16), vh,
                     preferred_element_type=jnp.float32)            # (H, T, hd)

    # Single output projection over all heads: (T, H*hd) @ (H*hd, E).
    ctx_cat = jnp.concatenate([ctx[h] for h in range(H)], axis=-1)  # (T, H*hd)
    out = jnp.dot(ctx_cat.astype(jnp.bfloat16), wo_ref[...],
                  preferred_element_type=jnp.float32) + bo_ref[...]
    y_ref[...] = xb + out                                           # residual


def encoder_block_forward(x, bias, blk):
    B, T, E = x.shape
    kern = functools.partial(encoder_block_kernel,
                             nr_heads=NR_HEADS, head_dim=HEAD_DIM)
    return pl.pallas_call(
        kern,
        out_shape=(jax.ShapeDtypeStruct((B, T, E), jnp.float32),
                   jax.ShapeDtypeStruct((B, NR_HEADS, T, T), jnp.float32)),
        grid_spec=pltpu.PrefetchScalarGridSpec(
            num_scalar_prefetch=0,
            grid=(B,),
            in_specs=[
                pl.BlockSpec((None, T, E), lambda b: (b, 0, 0)),
                pl.BlockSpec((None, 1, T), lambda b: (b, 0, 0)),
                _full_spec(blk["wqkv"].shape), _full_spec(blk["bqkv"].shape),
                _full_spec(blk["wo"].shape), _full_spec(blk["bo"].shape),
            ],
            out_specs=(
                pl.BlockSpec((None, T, E), lambda b: (b, 0, 0)),
                pl.BlockSpec((None, NR_HEADS, T, T), lambda b: (b, 0, 0, 0)),
            ),
        ),
        compiler_params=_CPARAMS,
    )(x, bias, blk["wqkv"], blk["bqkv"], blk["wo"], blk["bo"])


# --------------------------------------------------------------------------
# Full Encoder forward
# --------------------------------------------------------------------------
def encoder_forward(params, x, mask, pos_emb):
    h = pre_net_forward(x, pos_emb, params)
    # Additive key-padding bias, precomputed once, lane-aligned (B, 1, T).
    bias = ((1.0 - mask) * (-1e9))[:, None, :].astype(jnp.float32)
    att_heads = []
    for blk in params["blocks"]:
        h, att = encoder_block_forward(h, bias, blk)
        att_heads.append(att)
    return h, tuple(att_heads)


# --------------------------------------------------------------------------
# Deterministic parameter construction
# --------------------------------------------------------------------------
def make_params(key, in_channels, emb_channels):
    eps = 1e-5
    keys = iter(jax.random.split(key, 64))

    def rnd(shape, s=0.1):
        return (s * jax.random.normal(next(keys), shape)).astype(jnp.float32)

    pre_convs = []
    cin = in_channels
    for _ in range(3):
        w = rnd((KSIZE, cin, emb_channels))          # (K, Cin, Cout)
        conv_b = rnd((emb_channels,))
        gamma = 1.0 + rnd((emb_channels,))
        beta = rnd((emb_channels,))
        running_mean = rnd((emb_channels,))
        running_var = 1.0 + jnp.abs(rnd((emb_channels,)))
        inv = gamma / jnp.sqrt(running_var + eps)
        pre_convs.append({
            # im2col layout: row k*Cin + c  <->  tap k, input channel c
            "w": w.reshape(KSIZE * cin, emb_channels).astype(jnp.bfloat16),
            "scale": inv.reshape(1, emb_channels),
            "shift": ((conv_b - running_mean) * inv + beta)
                     .reshape(1, emb_channels),
        })
        cin = emb_channels

    qkv = NR_HEADS * HEAD_DIM
    blocks = []
    for _ in range(3):
        wq, wk, wv = rnd((emb_channels, qkv)), rnd((emb_channels, qkv)), rnd((emb_channels, qkv))
        bq, bk, bv = rnd((1, qkv)), rnd((1, qkv)), rnd((1, qkv))
        blocks.append({
            "wqkv": jnp.concatenate([wq, wk, wv], axis=1).astype(jnp.bfloat16),
            "bqkv": jnp.concatenate([bq, bk, bv], axis=1),
            "wo": rnd((qkv, emb_channels)).astype(jnp.bfloat16),
            "bo": rnd((1, emb_channels)),
        })

    return {
        "pre_convs": pre_convs,
        "lin_w": rnd((emb_channels, emb_channels)).astype(jnp.bfloat16),
        "lin_b": rnd((1, emb_channels)),
        "pos_alpha": jnp.ones((1, 1), jnp.float32),   # nn.Parameter(torch.ones(1))
        "blocks": blocks,
    }


if __name__ == "__main__":
    B, T = 2, 16
    IN_CH, EMB = 8, 128      # lane-dense channel width (multiple of 128)

    key = jax.random.PRNGKey(0)
    k_par, k_x, k_pos = jax.random.split(key, 3)

    params = make_params(k_par, IN_CH, EMB)
    x = jax.random.normal(k_x, (B, T, IN_CH), dtype=jnp.float32)
    pos_emb = jax.random.normal(k_pos, (B, T, EMB), dtype=jnp.float32)
    # key-padding mask: 1.0 = valid, 0.0 = padded (last 4 steps of batch 1)
    mask = jnp.ones((B, T), jnp.float32).at[1, -4:].set(0.0)

    out, att_heads = encoder_forward(params, x, mask, pos_emb)
    jax.block_until_ready(out)
    jax.block_until_ready(att_heads)
    assert out.shape == (B, T, EMB)
    assert all(a.shape == (B, NR_HEADS, T, T) for a in att_heads)
    assert bool(jnp.all(jnp.isfinite(out)))
    print("KERNEL_OK")
</pallas_src>

<mosaic_0001>
module attributes {stable_mosaic.version = 11 : i64} {
  func.func @pre_net_kernel(%arg0: i32, %arg1: memref<1x20x8xf32, #tpu.memory_space<vmem>>, %arg2: memref<40x128xbf16, #tpu.memory_space<vmem>>, %arg3: memref<1x128xf32, #tpu.memory_space<vmem>>, %arg4: memref<1x128xf32, #tpu.memory_space<vmem>>, %arg5: memref<640x128xbf16, #tpu.memory_space<vmem>>, %arg6: memref<1x128xf32, #tpu.memory_space<vmem>>, %arg7: memref<1x128xf32, #tpu.memory_space<vmem>>, %arg8: memref<640x128xbf16, #tpu.memory_space<vmem>>, %arg9: memref<1x128xf32, #tpu.memory_space<vmem>>, %arg10: memref<1x128xf32, #tpu.memory_space<vmem>>, %arg11: memref<128x128xbf16, #tpu.memory_space<vmem>>, %arg12: memref<1x128xf32, #tpu.memory_space<vmem>>, %arg13: memref<1x1xf32, #tpu.memory_space<vmem>>, %arg14: memref<1x16x128xf32, #tpu.memory_space<vmem>>, %arg15: memref<1x16x128xf32, #tpu.memory_space<vmem>>) attributes {dimension_semantics = [#tpu.dimension_semantics<parallel>], iteration_bounds = array<i64: 2>, scalar_prefetch = 0 : i64, scratch_operands = 0 : i64, tpu.core_type = #tpu.core_type<tc>, window_params = [{transform_indices = @transform_0, window_bounds = array<i64: 1, 20, 8>}, {pipeline_mode = #tpu.pipeline_mode<synchronous>, transform_indices = @transform_1, window_bounds = array<i64: 40, 128>}, {pipeline_mode = #tpu.pipeline_mode<synchronous>, transform_indices = @transform_2, window_bounds = array<i64: 1, 128>}, {pipeline_mode = #tpu.pipeline_mode<synchronous>, transform_indices = @transform_3, window_bounds = array<i64: 1, 128>}, {pipeline_mode = #tpu.pipeline_mode<synchronous>, transform_indices = @transform_4, window_bounds = array<i64: 640, 128>}, {pipeline_mode = #tpu.pipeline_mode<synchronous>, transform_indices = @transform_5, window_bounds = array<i64: 1, 128>}, {pipeline_mode = #tpu.pipeline_mode<synchronous>, transform_indices = @transform_6, window_bounds = array<i64: 1, 128>}, {pipeline_mode = #tpu.pipeline_mode<synchronous>, transform_indices = @transform_7, window_bounds = array<i64: 640, 128>}, {pipeline_mode = #tpu.pipeline_mode<synchronous>, transform_indices = @transform_8, window_bounds = array<i64: 1, 128>}, {pipeline_mode = #tpu.pipeline_mode<synchronous>, transform_indices = @transform_9, window_bounds = array<i64: 1, 128>}, {pipeline_mode = #tpu.pipeline_mode<synchronous>, transform_indices = @transform_10, window_bounds = array<i64: 128, 128>}, {pipeline_mode = #tpu.pipeline_mode<synchronous>, transform_indices = @transform_11, window_bounds = array<i64: 1, 128>}, {pipeline_mode = #tpu.pipeline_mode<synchronous>, transform_indices = @transform_12, window_bounds = array<i64: 1, 1>}, {transform_indices = @transform_13, window_bounds = array<i64: 1, 16, 128>}, {transform_indices = @transform_14, window_bounds = array<i64: 1, 16, 128>}]} {
    %c0 = arith.constant 0 : index
    %c0_0 = arith.constant 0 : index
    %c0_1 = arith.constant 0 : index
    %0 = vector.load %arg1[%c0, %c0_0, %c0_1] : memref<1x20x8xf32, #tpu.memory_space<vmem>>, vector<1x20x8xf32>
    %1 = vector.shape_cast %0 : vector<1x20x8xf32> to vector<20x8xf32>
    %2 = arith.truncf %1 : vector<20x8xf32> to vector<20x8xbf16>
    %3 = vector.extract_strided_slice %2 {offsets = [0, 0], sizes = [16, 8], strides = [1, 1]} : vector<20x8xbf16> to vector<16x8xbf16>
    %4 = vector.extract_strided_slice %2 {offsets = [1, 0], sizes = [16, 8], strides = [1, 1]} : vector<20x8xbf16> to vector<16x8xbf16>
    %5 = vector.extract_strided_slice %2 {offsets = [2, 0], sizes = [16, 8], strides = [1, 1]} : vector<20x8xbf16> to vector<16x8xbf16>
    %6 = vector.extract_strided_slice %2 {offsets = [3, 0], sizes = [16, 8], strides = [1, 1]} : vector<20x8xbf16> to vector<16x8xbf16>
    %7 = vector.extract_strided_slice %2 {offsets = [4, 0], sizes = [16, 8], strides = [1, 1]} : vector<20x8xbf16> to vector<16x8xbf16>
    %8 = tpu.concatenate %3, %4, %5, %6, %7 in 1 : vector<16x8xbf16>, vector<16x8xbf16>, vector<16x8xbf16>, vector<16x8xbf16>, vector<16x8xbf16> -> vector<16x40xbf16>
    %c0_2 = arith.constant 0 : index
    %c0_3 = arith.constant 0 : index
    %9 = vector.load %arg2[%c0_2, %c0_3] : memref<40x128xbf16, #tpu.memory_space<vmem>>, vector<40x128xbf16>
    %cst = arith.constant dense<0.000000e+00> : vector<16x128xf32>
    %10 = tpu.matmul %8, %9, %cst {dimension_numbers = #tpu.dot_dimension_numbers<[1], [0], [0], [1], [0, 0, 1, 1], [], []>} : vector<16x40xbf16>, vector<40x128xbf16>, vector<16x128xf32> -> vector<16x128xf32>
    %c0_4 = arith.constant 0 : index
    %c0_5 = arith.constant 0 : index
    %11 = vector.load %arg3[%c0_4, %c0_5] : memref<1x128xf32, #tpu.memory_space<vmem>>, vector<1x128xf32>
    %12 = vector.broadcast %11 : vector<1x128xf32> to vector<16x128xf32>
    %13 = arith.mulf %10, %12 : vector<16x128xf32>
    %c0_6 = arith.constant 0 : index
    %c0_7 = arith.constant 0 : index
    %14 = vector.load %arg4[%c0_6, %c0_7] : memref<1x128xf32, #tpu.memory_space<vmem>>, vector<1x128xf32>
    %15 = vector.broadcast %14 : vector<1x128xf32> to vector<16x128xf32>
    %16 = arith.addf %13, %15 : vector<16x128xf32>
    %cst_8 = arith.constant 0.000000e+00 : f32
    %17 = vector.broadcast %cst_8 : f32 to vector<16x128xf32>
    %18 = arith.maximumf %16, %17 : vector<16x128xf32>
    %cst_9 = arith.constant 0.000000e+00 : bf16
    %19 = vector.broadcast %cst_9 : bf16 to vector<2x128xbf16>
    %20 = arith.truncf %18 : vector<16x128xf32> to vector<16x128xbf16>
    %21 = tpu.concatenate %19, %20, %19 in 0 : vector<2x128xbf16>, vector<16x128xbf16>, vector<2x128xbf16> -> vector<20x128xbf16>
    %22 = vector.extract_strided_slice %21 {offsets = [0, 0], sizes = [16, 128], strides = [1, 1]} : vector<20x128xbf16> to vector<16x128xbf16>
    %23 = vector.extract_strided_slice %21 {offsets = [1, 0], sizes = [16, 128], strides = [1, 1]} : vector<20x128xbf16> to vector<16x128xbf16>
    %24 = vector.extract_strided_slice %21 {offsets = [2, 0], sizes = [16, 128], strides = [1, 1]} : vector<20x128xbf16> to vector<16x128xbf16>
    %25 = vector.extract_strided_slice %21 {offsets = [3, 0], sizes = [16, 128], strides = [1, 1]} : vector<20x128xbf16> to vector<16x128xbf16>
    %26 = vector.extract_strided_slice %21 {offsets = [4, 0], sizes = [16, 128], strides = [1, 1]} : vector<20x128xbf16> to vector<16x128xbf16>
    %27 = tpu.concatenate %22, %23, %24, %25, %26 in 1 : vector<16x128xbf16>, vector<16x128xbf16>, vector<16x128xbf16>, vector<16x128xbf16>, vector<16x128xbf16> -> vector<16x640xbf16>
    %c0_10 = arith.constant 0 : index
    %c0_11 = arith.constant 0 : index
    %28 = vector.load %arg5[%c0_10, %c0_11] : memref<640x128xbf16, #tpu.memory_space<vmem>>, vector<640x128xbf16>
    %cst_12 = arith.constant dense<0.000000e+00> : vector<16x128xf32>
    %29 = tpu.matmul %27, %28, %cst_12 {dimension_numbers = #tpu.dot_dimension_numbers<[1], [0], [0], [1], [0, 0, 1, 1], [], []>} : vector<16x640xbf16>, vector<640x128xbf16>, vector<16x128xf32> -> vector<16x128xf32>
    %c0_13 = arith.constant 0 : index
    %c0_14 = arith.constant 0 : index
    %30 = vector.load %arg6[%c0_13, %c0_14] : memref<1x128xf32, #tpu.memory_space<vmem>>, vector<1x128xf32>
    %31 = vector.broadcast %30 : vector<1x128xf32> to vector<16x128xf32>
    %32 = arith.mulf %29, %31 : vector<16x128xf32>
    %c0_15 = arith.constant 0 : index
    %c0_16 = arith.constant 0 : index
    %33 = vector.load %arg7[%c0_15, %c0_16] : memref<1x128xf32, #tpu.memory_space<vmem>>, vector<1x128xf32>
    %34 = vector.broadcast %33 : vector<1x128xf32> to vector<16x128xf32>
    %35 = arith.addf %32, %34 : vector<16x128xf32>
    %cst_17 = arith.constant 0.000000e+00 : f32
    %36 = vector.broadcast %cst_17 : f32 to vector<16x128xf32>
    %37 = arith.maximumf %35, %36 : vector<16x128xf32>
    %cst_18 = arith.constant 0.000000e+00 : bf16
    %38 = vector.broadcast %cst_18 : bf16 to vector<2x128xbf16>
    %39 = arith.truncf %37 : vector<16x128xf32> to vector<16x128xbf16>
    %40 = tpu.concatenate %38, %39, %38 in 0 : vector<2x128xbf16>, vector<16x128xbf16>, vector<2x128xbf16> -> vector<20x128xbf16>
    %41 = vector.extract_strided_slice %40 {offsets = [0, 0], sizes = [16, 128], strides = [1, 1]} : vector<20x128xbf16> to vector<16x128xbf16>
    %42 = vector.extract_strided_slice %40 {offsets = [1, 0], sizes = [16, 128], strides = [1, 1]} : vector<20x128xbf16> to vector<16x128xbf16>
    %43 = vector.extract_strided_slice %40 {offsets = [2, 0], sizes = [16, 128], strides = [1, 1]} : vector<20x128xbf16> to vector<16x128xbf16>
    %44 = vector.extract_strided_slice %40 {offsets = [3, 0], sizes = [16, 128], strides = [1, 1]} : vector<20x128xbf16> to vector<16x128xbf16>
    %45 = vector.extract_strided_slice %40 {offsets = [4, 0], sizes = [16, 128], strides = [1, 1]} : vector<20x128xbf16> to vector<16x128xbf16>
    %46 = tpu.concatenate %41, %42, %43, %44, %45 in 1 : vector<16x128xbf16>, vector<16x128xbf16>, vector<16x128xbf16>, vector<16x128xbf16>, vector<16x128xbf16> -> vector<16x640xbf16>
    %c0_19 = arith.constant 0 : index
    %c0_20 = arith.constant 0 : index
    %47 = vector.load %arg8[%c0_19, %c0_20] : memref<640x128xbf16, #tpu.memory_space<vmem>>, vector<640x128xbf16>
    %cst_21 = arith.constant dense<0.000000e+00> : vector<16x128xf32>
    %48 = tpu.matmul %46, %47, %cst_21 {dimension_numbers = #tpu.dot_dimension_numbers<[1], [0], [0], [1], [0, 0, 1, 1], [], []>} : vector<16x640xbf16>, vector<640x128xbf16>, vector<16x128xf32> -> vector<16x128xf32>
    %c0_22 = arith.constant 0 : index
    %c0_23 = arith.constant 0 : index
    %49 = vector.load %arg9[%c0_22, %c0_23] : memref<1x128xf32, #tpu.memory_space<vmem>>, vector<1x128xf32>
    %50 = vector.broadcast %49 : vector<1x128xf32> to vector<16x128xf32>
    %51 = arith.mulf %48, %50 : vector<16x128xf32>
    %c0_24 = arith.constant 0 : index
    %c0_25 = arith.constant 0 : index
    %52 = vector.load %arg10[%c0_24, %c0_25] : memref<1x128xf32, #tpu.memory_space<vmem>>, vector<1x128xf32>
    %53 = vector.broadcast %52 : vector<1x128xf32> to vector<16x128xf32>
    %54 = arith.addf %51, %53 : vector<16x128xf32>
    %cst_26 = arith.constant 0.000000e+00 : f32
    %55 = vector.broadcast %cst_26 : f32 to vector<16x128xf32>
    %56 = arith.maximumf %54, %55 : vector<16x128xf32>
    %57 = arith.truncf %56 : vector<16x128xf32> to vector<16x128xbf16>
    %c0_27 = arith.constant 0 : index
    %c0_28 = arith.constant 0 : index
    %58 = vector.load %arg11[%c0_27, %c0_28] : memref<128x128xbf16, #tpu.memory_space<vmem>>, vector<128x128xbf16>
    %cst_29 = arith.constant dense<0.000000e+00> : vector<16x128xf32>
    %59 = tpu.matmul %57, %58, %cst_29 {dimension_numbers = #tpu.dot_dimension_numbers<[1], [0], [0], [1], [0, 0, 1, 1], [], []>} : vector<16x128xbf16>, vector<128x128xbf16>, vector<16x128xf32> -> vector<16x128xf32>
    %c0_30 = arith.constant 0 : index
    %c0_31 = arith.constant 0 : index
    %60 = vector.load %arg12[%c0_30, %c0_31] : memref<1x128xf32, #tpu.memory_space<vmem>>, vector<1x128xf32>
    %61 = vector.broadcast %60 : vector<1x128xf32> to vector<16x128xf32>
    %62 = arith.addf %59, %61 : vector<16x128xf32>
    %cst_32 = arith.constant 0.000000e+00 : f32
    %63 = vector.broadcast %cst_32 : f32 to vector<16x128xf32>
    %64 = arith.maximumf %62, %63 : vector<16x128xf32>
    %c0_33 = arith.constant 0 : index
    %c0_34 = arith.constant 0 : index
    %65 = vector.load %arg13[%c0_33, %c0_34] : memref<1x1xf32, #tpu.memory_space<vmem>>, vector<1x1xf32>
    %c0_35 = arith.constant 0 : index
    %c0_36 = arith.constant 0 : index
    %c0_37 = arith.constant 0 : index
    %66 = vector.load %arg14[%c0_35, %c0_36, %c0_37] : memref<1x16x128xf32, #tpu.memory_space<vmem>>, vector<1x16x128xf32>
    %67 = vector.shape_cast %66 : vector<1x16x128xf32> to vector<16x128xf32>
    %68 = vector.broadcast %65 : vector<1x1xf32> to vector<16x128xf32>
    %69 = arith.mulf %68, %67 : vector<16x128xf32>
    %70 = arith.addf %64, %69 : vector<16x128xf32>
    %c0_38 = arith.constant 0 : index
    %c0_39 = arith.constant 0 : index
    %c0_40 = arith.constant 0 : index
    %71 = vector.load %arg15[%c0_38, %c0_39, %c0_40] : memref<1x16x128xf32, #tpu.memory_space<vmem>>, vector<1x16x128xf32>
    %72 = vector.shape_cast %71 : vector<1x16x128xf32> to vector<16x128xf32>
    %73 = vector.shape_cast %70 : vector<16x128xf32> to vector<1x16x128xf32>
    tpu.vector_store %arg15[%c0_38, %c0_39, %c0_40], %73 {strides = array<i32>} : memref<1x16x128xf32, #tpu.memory_space<vmem>>, vector<1x16x128xf32>,
    return
  }
  func.func @transform_0(%arg0: i32) -> (i32, i32, i32) {
    %c0_i32 = arith.constant 0 : i32
    %c0_i32_0 = arith.constant 0 : i32
    %c0_i32_1 = arith.constant 0 : i32
    return %arg0, %c0_i32, %c0_i32_0 : i32, i32, i32
  }
  func.func @transform_1(%arg0: i32) -> (i32, i32) {
    %c0_i32 = arith.constant 0 : i32
    %c0_i32_0 = arith.constant 0 : i32
    %c0_i32_1 = arith.constant 0 : i32
    return %c0_i32, %c0_i32_0 : i32, i32
  }
  func.func @transform_2(%arg0: i32) -> (i32, i32) {
    %c0_i32 = arith.constant 0 : i32
    %c0_i32_0 = arith.constant 0 : i32
    %c0_i32_1 = arith.constant 0 : i32
    return %c0_i32, %c0_i32_0 : i32, i32
  }
  func.func @transform_3(%arg0: i32) -> (i32, i32) {
    %c0_i32 = arith.constant 0 : i32
    %c0_i32_0 = arith.constant 0 : i32
    %c0_i32_1 = arith.constant 0 : i32
    return %c0_i32, %c0_i32_0 : i32, i32
  }
  func.func @transform_4(%arg0: i32) -> (i32, i32) {
    %c0_i32 = arith.constant 0 : i32
    %c0_i32_0 = arith.constant 0 : i32
    %c0_i32_1 = arith.constant 0 : i32
    return %c0_i32, %c0_i32_0 : i32, i32
  }
  func.func @transform_5(%arg0: i32) -> (i32, i32) {
    %c0_i32 = arith.constant 0 : i32
    %c0_i32_0 = arith.constant 0 : i32
    %c0_i32_1 = arith.constant 0 : i32
    return %c0_i32, %c0_i32_0 : i32, i32
  }
  func.func @transform_6(%arg0: i32) -> (i32, i32) {
    %c0_i32 = arith.constant 0 : i32
    %c0_i32_0 = arith.constant 0 : i32
    %c0_i32_1 = arith.constant 0 : i32
    return %c0_i32, %c0_i32_0 : i32, i32
  }
  func.func @transform_7(%arg0: i32) -> (i32, i32) {
    %c0_i32 = arith.constant 0 : i32
    %c0_i32_0 = arith.constant 0 : i32
    %c0_i32_1 = arith.constant 0 : i32
    return %c0_i32, %c0_i32_0 : i32, i32
  }
  func.func @transform_8(%arg0: i32) -> (i32, i32) {
    %c0_i32 = arith.constant 0 : i32
    %c0_i32_0 = arith.constant 0 : i32
    %c0_i32_1 = arith.constant 0 : i32
    return %c0_i32, %c0_i32_0 : i32, i32
  }
  func.func @transform_9(%arg0: i32) -> (i32, i32) {
    %c0_i32 = arith.constant 0 : i32
    %c0_i32_0 = arith.constant 0 : i32
    %c0_i32_1 = arith.constant 0 : i32
    return %c0_i32, %c0_i32_0 : i32, i32
  }
  func.func @transform_10(%arg0: i32) -> (i32, i32) {
    %c0_i32 = arith.constant 0 : i32
    %c0_i32_0 = arith.constant 0 : i32
    %c0_i32_1 = arith.constant 0 : i32
    return %c0_i32, %c0_i32_0 : i32, i32
  }
  func.func @transform_11(%arg0: i32) -> (i32, i32) {
    %c0_i32 = arith.constant 0 : i32
    %c0_i32_0 = arith.constant 0 : i32
    %c0_i32_1 = arith.constant 0 : i32
    return %c0_i32, %c0_i32_0 : i32, i32
  }
  func.func @transform_12(%arg0: i32) -> (i32, i32) {
    %c0_i32 = arith.constant 0 : i32
    %c0_i32_0 = arith.constant 0 : i32
    %c0_i32_1 = arith.constant 0 : i32
    return %c0_i32, %c0_i32_0 : i32, i32
  }
  func.func @transform_13(%arg0: i32) -> (i32, i32, i32) {
    %c0_i32 = arith.constant 0 : i32
    %c0_i32_0 = arith.constant 0 : i32
    %c0_i32_1 = arith.constant 0 : i32
    return %arg0, %c0_i32, %c0_i32_0 : i32, i32, i32
  }
  func.func @transform_14(%arg0: i32) -> (i32, i32, i32) {
    %c0_i32 = arith.constant 0 : i32
    %c0_i32_0 = arith.constant 0 : i32
    %c0_i32_1 = arith.constant 0 : i32
    return %arg0, %c0_i32, %c0_i32_0 : i32, i32, i32
  }
}

</mosaic_0001>

<bundles_post_ra>
// kernel: tpu_custom_call.1
= control target key start
LH: loop header
LB: loop body
LE: loop exit
PB: predicated region body
PF: predicated region fallthrough
CT: control target
= control target key end

     0   :  { %s2924_s0 = inlined_call_operand.vmem [shape: f32[2,20,8], index: 0, kind: input, shape index: {}]   ;;  %s2925_s1 = inlined_call_operand.hbm [shape: bf16[40,128], index: 1, kind: input, shape index: {}]   ;;  %s2926_s2 = inlined_call_operand.vmem [shape: f32[1,128], index: 2, kind: input, shape index: {}]   ;;  %s2927_s3 = inlined_call_operand.vmem [shape: f32[1,128], index: 3, kind: input, shape index: {}]   ;;  %s2928_s4 = inlined_call_operand.hbm [shape: bf16[640,128], index: 4, kind: input, shape index: {}]   ;;  %s2929_s5 = inlined_call_operand.vmem [shape: f32[1,128], index: 5, kind: input, shape index: {}]   ;;  %s2930_s6 = inlined_call_operand.vmem [shape: f32[1,128], index: 6, kind: input, shape index: {}]   ;;  %s2931_s7 = inlined_call_operand.hbm [shape: bf16[640,128], index: 7, kind: input, shape index: {}]   ;;  %s2932_s8 = inlined_call_operand.vmem [shape: f32[1,128], index: 8, kind: input, shape index: {}]   ;;  %s2933_s9 = inlined_call_operand.vmem [shape: f32[1,128], index: 9, kind: input, shape index: {}]   ;;  %s2934_s10 = inlined_call_operand.vmem [shape: bf16[128,128], index: 10, kind: input, shape index: {}]   ;;  %s2935_s11 = inlined_call_operand.vmem [shape: f32[1,128], index: 11, kind: input, shape index: {}]   ;;  %s2936_s12 = inlined_call_operand.<no memory space> [shape: f32[1,1], index: 12, kind: input, shape index: {}]   ;;  %s2937_s13 = inlined_call_operand.hbm [shape: f32[2,16,128], index: 13, kind: input, shape index: {}]   ;;  %s2938_s14 = inlined_call_operand.hbm [shape: f32[2,16,128], index: 14, kind: output, shape index: {}]  }
   0x1   :  { %2942 = sst [smem:[#allocation20_spill]] %s2925_s1  ;;  %v19_v0 = vstv %s2936_s12 }
   0x2   :  { %2943 = sst [smem:[#allocation21_spill]] %s2928_s4  ;;  %20 = vst [vmem:[#allocation2] sm:$0x1] %v19_v0 }
   0x3   :  { %2944 = sst [smem:[#allocation22_spill]] %s2931_s7 }
   0x4   :  { %21 = vsyncpa [#allocation4], 0 }
   0x5   :  { %22 = vsyncpa [#allocation7], 0 }
   0x6   :  { %23 = vsyncpa [#allocation10], 0 }
   0x7   :  { %25 = vsyncpa [#allocation10 + $0x1], 0 }
   0x8   :  { %26 = vsyncpa [#allocation5], 0 }
   0x9   :  { %28 = vsyncpa [#allocation5 + $0x1], 0  ;;  %s2672_s15 = smov 0   ;;  %s2674_s16 = smov 0  }
   0xa   :  { %s2676_s17 = smov 0   ;;  %s2678_s18 = smov 0  }
   0xb LB: > { %2945 = sst [smem:[#allocation16_spill]] %s2567_s15  ;;  %s2693_s12 = sadd.s32 4294967295, %s2579_s18   ;;  %s2579_s18 = sphi %s2678_s18, %s2967_s18   ;;  %s2575_s17 = sphi %s2676_s17, %s2964_s17   ;;  %s2571_s16 = sphi %s2674_s16, %s2966_s16   ;;  %s2567_s15 = sphi %s2672_s15, %s2965_s15  }
   0xc   : > { %2946 = sst [smem:[#allocation17_spill]] %s2575_s17  ;;  %s1809_s19 = sadd.s32 4294967294, %s2579_s18  }
   0xd   : > { %p332_p0 = scmp.ne.s32.totalorder %s2571_s16, %s2567_s15  ;;  %p333_p1 = scmp.eq.s32.totalorder %s2693_s12, 0 }
   0xe   : > { %p356_p2 = scmp.eq.s32.totalorder %s2693_s12, 1  ;;  %p362_p3 = scmp.eq.s32.totalorder %s1809_s19, 1 }
   0xf   : > { %p2702_p4 = por %p333_p1, %p332_p0  ;;  %p1810_p5 = scmp.ge.s32.totalorder %s2579_s18, 1 }
  0x10   : > { %p2707_p6 = por %p362_p3, %p332_p0  ;;  %p369_p7 = scmp.lt.s32.totalorder %s2579_s18, 3 }
  0x11   : > { %s2951_s4 = sld [smem:[#allocation21_spill]]  ;;  %s2581_s26 = smov [#allocation6]  }
  0x12   : > { %s2948_s21 = scalar_select %p2707_p6, 1, 0 }
  0x13   : > { %p2712_p8 = pnand %p1810_p5, %p369_p7  ;;  %s402_s27 = sshll.u32 %s2581_s26, 4  ;;  %s403_s27 = int_to_ptr.vmem [resolvable:$true] %s402_s27 }
  0x14   : > { %2949 = sst [smem:[#allocation18_spill]] %s2948_s21  ;;  %s2582_s23 = smov 64  }
  0x15   : > { %p2304_p9 = pneg %p2712_p8  ;;  %s2953_s1 = sld [smem:[#allocation20_spill]] }
  0x16   : > { %s2583_s24 = smov 4   ;;  %s2584_s26 = smov [#allocation3]  }
  0x17   : > { %s400_s25 = sshll.u32 %s2951_s4, 4  ;;  %p2724_p11 = pnand %p2304_p9, %p333_p1  ;;  %s401_s25 = int_to_ptr.hbm [resolvable:$true] %s400_s25 }
  0x18   : > { %s382_s4 = sshll.u32 %s2584_s26, 4  ;;  %s2954_s7 = sld [smem:[#allocation22_spill]]  ;;  %s383_s4 = int_to_ptr.vmem [resolvable:$true] %s382_s4 }
  0x19   : > { %2310 = dma.hbm_to_vmem [thread:$0]  (!%p2724_p11), %s401_s25, 5120, %s403_s27, [#allocation7], %s2582_s23, %s2582_s23, %s2583_s24  }
  0x1a   : > { %s2585_s30 = smov [#allocation8]   ;;  %s2739_s25 = sadd.s32 1, %s2579_s18  }
  0x1b   : > { %s380_s19 = sshll.u32 %s2953_s1, 4  ;;  %s422_s1 = sshll.u32 %s2585_s30, 4  ;;  %s381_s19 = int_to_ptr.hbm [resolvable:$true] %s380_s19  ;;  %s423_s1 = int_to_ptr.vmem [resolvable:$true] %s422_s1 }
  0x1c   : > { %2307 = dma.hbm_to_vmem [thread:$0]  (!%p2724_p11), %s381_s19, 320, %s383_s4, [#allocation4], %s2582_s23, %s2582_s23, %s2583_s24  }
  0x1d   : > { %s316_s27 = ssub.s32 %s2579_s18, %s2739_s25  ;;  %s319_s26 = sadd.s32 1, %s2575_s17 }
  0x1e   : > { %s420_s29 = sshll.u32 %s2954_s7, 4  ;;  %p317_p12 = scmp.eq.s32.totalorder %s316_s27, 0  ;;  %s421_s29 = int_to_ptr.hbm [resolvable:$true] %s420_s29 }
  0x1f   : > { %2313 = dma.hbm_to_vmem [thread:$0]  (!%p2724_p11), %s421_s29, 5120, %s423_s1, [#allocation7], %s2582_s23, %s2582_s23, %s2583_s24  }
  0x20   : > { %p326_p13 = scmp.ne.s32.totalorder %s2575_s17, %s2571_s16  ;;  %p327_p0 = scmp.eq.s32.totalorder %s2579_s18, 0 }
  0x21   : > { %p2325_p3 = scmp.lt.s32.totalorder %s2579_s18, 2  ;;  %s459_s21 = sand.u32 1, %s2575_s17  }
  0x22   : > { %s2751_s15 = scalar_select %p317_p12, %s2575_s17, %s319_s26  }
  0x23   : > { %p328_p5 = por %p327_p0, %p326_p13  ;;  %p2755_p7 = por %p356_p2, %p326_p13 }
  0x24   : > { %2955 = sst [smem:[#allocation19_spill]] %s2751_s15  ;;  %s2195_s19 = sshll.u32 %s2579_s18, 4 }
  0x25   : > { %s1815_s28 = sshll.u32 %s459_s21, 4  ;;  %s468_s23 = scalar_lea.hbm %s2937_s13, %s2195_s19 }
  0x26   : > { %s469_s24 = sshll.u32 %s468_s23, 4  ;;  %s463_s29 = scalar_lea.vmem [#allocation9], %s1815_s28  ;;  %s470_s24 = int_to_ptr.hbm [resolvable:$true] %s469_s24 }
  0x27   : > { %s471_s27 = sshll.u32 %s463_s29, 4  ;;  %p2766_p9 = pnand %p2325_p3, %p328_p5  ;;  %s472_s27 = int_to_ptr.vmem [resolvable:$true] %s471_s27 }
  0x28   : > { %s460_s7 = scalar_lea.sflag [#allocation10], %s459_s21  ;;  %s2475_s15 = sshra.s32 %s470_s24, 4  ;;  %s2476_s15 = int_to_ptr.hbm [resolvable:$true] %s2475_s15 }
  0x29   : > { %s2477_s17 = scalar_lea.hbm %s2476_s15, 16  ;;  %p2479_p11 = pneg %p2766_p9 }
  0x2a   : > { %p2478_p2 = scmp.ne.s32.totalorder %s2476_s15, %s2477_s17  ;;  %s2482_s30 = scalar_lea.hbm %s2937_s13, 32 }
  0x2b   : > { %p2483_p0 = scmp.lt.s32.totalorder %s2476_s15, %s2937_s13  ;;  %p2484_p3 = scmp.lt.s32.totalorder %s2482_s30, %s2477_s17 }
  0x2c   : > { %p2480_p12 = pnand %p2479_p11, %p2478_p2 }
  0x2d   : > { %p2485_p5 = por %p2484_p3, %p2483_p0 }
  0x2e   : > { %p2481_p13 = pneg %p2480_p12 }
  0x30   : > { %p2486_p10 = pnand %p2485_p5, %p2481_p13 }
  0x32   : > { %2489 = shalt.err (!%p2486_p10)
}
  0x33   : > { %s2586_s21 = smov 128   ;;  %s2587_s29 = smov 8  }
  0x34   : > { %2317 = dma.hbm_to_vmem [thread:$0]  (!%p2766_p9), %s470_s24, 256, %s472_s27, %s460_s7, %s2586_s21, %s2586_s21, %s2587_s29  }
  0x35   : > { %483 = sbr.rel (%p2712_p8) target bundleno = 846 (0x34e), region = 76 }
  0x3a   : > { %2550 = dma.done.wait (%p333_p1), [#allocation4], 320  }
  0x3b   : > { %2552 = vsyncadd (%p333_p1), [#allocation4], 4294966976 }
  0x3c   : > { %2554 = dma.done.wait (%p333_p1), [#allocation7], 10240  }
  0x3d   : > { %2556 = vsyncadd (%p333_p1), [#allocation7], 4294957056  ;;  %s2791_s17 = sand.u32 1, %s2571_s16  }
  0x3e   : > { %s1822_s7 = sshll.u32 %s2791_s17, 4  ;;  %s501_s22 = scalar_lea.sflag [#allocation10], %s2791_s17 }
  0x3f   : > { %s2797_s15 = scalar_lea.vmem [#allocation9], %s1822_s7 }
  0x40   : > { %2558 = dma.done.wait (%p2702_p4), %s501_s22, 256  }
  0x41   : > { %2560 = vsyncadd (%p2702_p4), %s501_s22, 4294967040  ;;  %p555_p1 = scmp.lt.s32.totalorder %s2693_s12, 1  ;;  %vm575_vm0 = vsmask.f32 7424  ;;  %vm596_vm1 = vsmask.f32 6400 }
  0x42   : > { %s2588_s20 = smov 8   ;;  %s2589_s30 = smov 24   ;;  %vm590_vm2 = vcmask 1046528   ;;  %vm608_vm3 = vcmask 1045504   ;;  %v630_v33 = vld [vmem:[#allocation3 + $0x10] sm:$0xf] }
  0x43   : > { %s556_s24 = scalar_select %p555_p1, %s2693_s12, 1  ;;  %v640_v34 = vunpack.c.l.b16 %v630_v33  ;;  %vm649_vm4 = vcmask 1043456   ;;  %v2197_v37 = vld [vmem:[#allocation3 + $0x8] sm:$0xff]  ;;  %v2196_v38 = vld [vmem:[#allocation3] sm:$0xff]  ;;  %v2202_v43 = vld [vmem:[#allocation6 + $0x20] sm:$0xff]  ;;  %vm614_vm5 = vcmask 64512  }
  0x44   : > { %s2590_s1 = smov 16   ;;  %s2591_s23 = smov 32   ;;  %v2205_v39 = vld [vmem:[#allocation6 + $0x38] sm:$0xff]  ;;  %v2204_v41 = vld [vmem:[#allocation6 + $0x30] sm:$0xff]  ;;  %v2203_v42 = vld [vmem:[#allocation6 + $0x28] sm:$0xff]  ;;  %vm617_vm6 = vcmask 130048  }
  0x45   : > { %s2287_s27 = smul.u32 24, %s556_s24  ;;  %v643_v35 = vpack.c.b16 %v640_v34, %v640_v34  ;;  %v2221_v40 = vld [vmem:[#allocation6 + $0xb8] sm:$0xff]  ;;  %1046 = vmatpush.bf16.msra.mxu1 %v2205_v39  ;;  %v2200_v45 = vld [vmem:[#allocation6 + $0x10] sm:$0xff]  ;;  %vm620_vm7 = vcmask 195584   ;;  %vm623_vm8 = vcmask 261120   ;;  %vm646_vm9 = vcmask 326656  }
  0x46   : > { %1074 = vmatpush.bf16.msra.mxu3 %v2221_v40  ;;  %v2201_v44 = vld [vmem:[#allocation6 + $0x18] sm:$0xff]  ;;  %v2220_v55 = vld [vmem:[#allocation6 + $0xb0] sm:$0xff]  ;;  %v2199_v57 = vld [vmem:[#allocation6 + $0x8] sm:$0xff]  ;;  %vm689_vm10 = vcmask 1040384   ;;  %s2525_s19 = scalar_lea.hbm %s2938_s14, 32 }
  0x47   : > { %s559_s28 = scalar_lea.vmem %s2924_s0, %s2287_s27  ;;  %v651_v36 = vsel %vm649_vm4, %v643_v35, 0  ;;  %v2213_v54 = vld [vmem:[#allocation6 + $0x78] sm:$0xff]  ;;  %v2212_v58 = vld [vmem:[#allocation6 + $0x70] sm:$0xff]  ;;  %v2219_v59 = vld [vmem:[#allocation6 + $0xa8] sm:$0xff] }
  0x48   : > { %v561_v1 = vld [vmem:[%s559_s28] sm:$0xff]  ;;  %v562_v2 = vld [vmem:[%s559_s28 + $0x8] sm:$0xff]  ;;  %v563_v3 = vld [vmem:[%s559_s28 + $0x10] sm:$0xf]  ;;  %658 = vmatpush.bf16.msra.mxu0 %v651_v36  ;;  %1060 = vmatpush.bf16.msra.mxu2 %v2213_v54 }
  0x49   : > { %v564_v4 = vpack.c.bf16 %v561_v1, %v561_v1  ;;  %v565_v5 = vpack.c.bf16 %v562_v2, %v562_v2  ;;  %v566_v6 = vpack.c.bf16 %v563_v3, %v563_v3  ;;  %1047 = vmatpush.bf16.msra.mxu1 %v2204_v41  ;;  %v2229_v56 = vld [vmem:[#allocation6 + $0xf8] sm:$0xff]  ;;  %v2228_v60 = vld [vmem:[#allocation6 + $0xf0] sm:$0xff]  ;;  %v2198_v61 = vld [vmem:[#allocation6] sm:$0xff] }
  0x4a   : > { %1075 = vmatpush.bf16.msra.mxu3 %v2220_v55  ;;  %v2211_v62 = vld [vmem:[#allocation6 + $0x68] sm:$0xff]  ;;  %v2218_v63 = vld [vmem:[#allocation6 + $0xa0] sm:$0xff]  ;;  %v2237_v1 = vld [vmem:[#allocation6 + $0x138] sm:$0xff] }
  0x4b   : > { %v569_v7 = vunpack.c.l.b16 %v564_v4  ;;  %v570_v8 = vunpack.c.l.b16 %v565_v5  ;;  %v573_v9 = vunpack.c.l.b16 %v566_v6  ;;  %v2227_v0 = vld [vmem:[#allocation6 + $0xe8] sm:$0xff]  ;;  %v2210_v2 = vld [vmem:[#allocation6 + $0x60] sm:$0xff]  ;;  %v2217_v3 = vld [vmem:[#allocation6 + $0x98] sm:$0xff] }
  0x4c   : > { %659 = vmatpush.bf16.msra.mxu0 %v2197_v37  ;;  %1061 = vmatpush.bf16.msra.mxu2 %v2212_v58  ;;  %v2226_v4 = vld [vmem:[#allocation6 + $0xe0] sm:$0xff]  ;;  %v2236_v5 = vld [vmem:[#allocation6 + $0x130] sm:$0xff]  ;;  %v2209_v6 = vld [vmem:[#allocation6 + $0x58] sm:$0xff] }
  0x4d   : > { %v2808_v10 = vpack.c.b16 %v570_v8, %v569_v7  ;;  %v574_v11 = vpack.c.b16 %v573_v9, %v573_v9  ;;  %1048 = vmatpush.bf16.msra.mxu1 %v2203_v42  ;;  %v2216_v7 = vld [vmem:[#allocation6 + $0x90] sm:$0xff]  ;;  %v2225_v8 = vld [vmem:[#allocation6 + $0xd8] sm:$0xff]  ;;  %v2235_v9 = vld [vmem:[#allocation6 + $0x128] sm:$0xff] }
  0x4e   : > { %1076 = vmatpush.bf16.msra.mxu3 %v2219_v59  ;;  %vm2827_vm11 = vmneg %vm689_vm10 }
  0x4f   : > { %v577_v12 = vshrl.u32 %v2808_v10, 16  ;;  %v579_v13 = vshll.u32 %v2808_v10, 16  ;;  %v584_v14 = vshll.u32 %v574_v11, 16  ;;  %v600_v15 = vshrl.u32 %v574_v11, 16 }
  0x50   : > { %v591_v27 = vrot.slane %v2808_v10, 1  ;;  %v592_v28 = vrot.slane %v574_v11, 1  ;;  %v609_v29 = vrot.slane %v2808_v10, 2  ;;  %v610_v30 = vrot.slane %v574_v11, 2  ;;  %660 = vmatpush.bf16.msra.mxu0 %v2196_v38  ;;  %1062 = vmatpush.bf16.msra.mxu2 %v2211_v62  ;;  %v2215_v11 = vld [vmem:[#allocation6 + $0x88] sm:$0xff] }
  0x51   : > { %v581_v16 = vrot.slane %v579_v13, 1  ;;  %v586_v17 = vrot.slane %v584_v14, 1  ;;  %v597_v18 = vrot.slane %v577_v12, 1  ;;  %v598_v19 = vrot.slane %v579_v13, 2  ;;  %1049 = vmatpush.bf16.msra.mxu1 %v2202_v43  ;;  %v2234_v13 = vld [vmem:[#allocation6 + $0x120] sm:$0xff] }
  0x52   : > { %v602_v20 = vrot.slane %v600_v15, 1  ;;  %v603_v21 = vrot.slane %v584_v14, 2  ;;  %v593_v31 = vsel %vm590_vm2, %v591_v27, %v592_v28  ;;  %v611_v32 = vsel %vm608_vm3, %v609_v29, %v610_v30  ;;  %1077 = vmatpush.bf16.msra.mxu3 %v2218_v63  ;;  %v2207_v14 = vld [vmem:[#allocation6 + $0x48] sm:$0xff]  ;;  %v2214_v15 = vld [vmem:[#allocation6 + $0x80] sm:$0xff]  ;;  %v2245_v63 = vld [vmem:[#allocation8 + $0x38] sm:$0xff] }
  0x53   : > { %v582_v22 = vor.u32 %v581_v16, %v577_v12  ;;  %v599_v23 = vor.u32 %v598_v19, %v597_v18  ;;  %v2224_v12 = vld [vmem:[#allocation6 + $0xd0] sm:$0xff]  ;;  %v2223_v16 = vld [vmem:[#allocation6 + $0xc8] sm:$0xff]  ;;  %v2206_v18 = vld [vmem:[#allocation6 + $0x40] sm:$0xff] }
  0x54   : > { %v604_v24 = vor.u32 %v603_v21, %v602_v20  ;;  %1088 = vmatpush.bf16.msrb.mxu0 %v2229_v56  ;;  %1063 = vmatpush.bf16.msra.mxu2 %v2210_v2  ;;  %v2222_v19 = vld [vmem:[#allocation6 + $0xc0] sm:$0xff]  ;;  %v2232_v20 = vld [vmem:[#allocation6 + $0x110] sm:$0xff]  ;;  %v2377_v21 = vld [vmem:[%s2926_s2] ss:$0 sm:$0xff] }
  0x55   : > { %v587_v25 = vsel %vm575_vm0, %v582_v22, %v586_v17  ;;  %1050 = vmatpush.bf16.msra.mxu1 %v2201_v44  ;;  %v2233_v17 = vld [vmem:[#allocation6 + $0x118] sm:$0xff]  ;;  %v2231_v22 = vld [vmem:[#allocation6 + $0x108] sm:$0xff]  ;;  %v2242_v2 = vld [vmem:[#allocation8 + $0x20] sm:$0xff] }
  0x56   : > { %588 = vrot.lane.b32.xlu0 %v587_v25, %s2588_s20  ;;  %v605_v26 = vsel %vm596_vm1, %v599_v23, %v604_v24  ;;  %1078 = vmatpush.bf16.msra.mxu3 %v2217_v3  ;;  %v2378_v25 = vld [vmem:[%s2927_s3] ss:$0 sm:$0xff]  ;;  %v2241_v3 = vld [vmem:[#allocation8 + $0x18] sm:$0xff] }
  0x57   : > { %606 = vrot.lane.b32.xlu1 %v605_v26, %s2589_s30  ;;  %v2230_v26 = vld [vmem:[#allocation6 + $0x100] sm:$0xff]  ;;  %s2286_s30 = sshll.u32 %s2693_s12, 4  ;;  %s1678_s12 = scalar_lea.sflag [#allocation5], %s2791_s17 }
  0x58   : > { %1089 = vmatpush.bf16.msrb.mxu0 %v2228_v60  ;;  %1064 = vmatpush.bf16.msra.mxu2 %v2209_v6  ;;  %v2253_v6 = vld [vmem:[#allocation8 + $0x78] sm:$0xff]  ;;  %s1689_s29 = scalar_lea.hbm %s2938_s14, %s2286_s30 }
  0x59   : > { %1051 = vmatpush.bf16.msra.mxu1 %v2200_v45  ;;  %s1692_s24 = sshll.u32 %s1689_s29, 4  ;;  %s1693_s24 = int_to_ptr.hbm [resolvable:$true] %s1692_s24 }
  0x5a   : > { %1079 = vmatpush.bf16.msra.mxu3 %v2216_v7  ;;  %v2260_v7 = vld [vmem:[#allocation8 + $0xb0] sm:$0xff] }
  0x5c   : > { %1090 = vmatpush.bf16.msrb.mxu0 %v2227_v0  ;;  %v2244_v0 = vld [vmem:[#allocation8 + $0x30] sm:$0xff] }
  0x5d   : > { %1052 = vmatpush.bf16.msra.mxu1 %v2199_v57 }
  0x5e   : > { %594 = vrot.lane.b32.xlu0 %v593_v31, %s2590_s1  ;;  %1080 = vmatpush.bf16.msra.mxu3 %v2215_v11  ;;  %v2259_v11 = vld [vmem:[#allocation8 + $0xa8] sm:$0xff]  ;;  %s554_s1 = scalar_lea.vmem [#allocation11], %s1822_s7 }
  0x5f   : > { %612 = vrot.lane.b32.xlu1 %v611_v32, %s2591_s23  ;;  %s1690_s22 = sshll.u32 %s554_s1, 4  ;;  %s1691_s22 = int_to_ptr.vmem [resolvable:$true] %s1690_s22 }
  0x60   : > { %1091 = vmatpush.bf16.msrb.mxu0 %v2226_v4  ;;  %v2261_v4 = vld [vmem:[#allocation8 + $0xb8] sm:$0xff] }
  0x61   : > { %1053 = vmatpush.bf16.msra.mxu1 %v2198_v61 }
  0x62   : > { %1081 = vmatpush.bf16.msra.mxu3 %v2214_v15  ;;  %v2258_v15 = vld [vmem:[#allocation8 + $0xa0] sm:$0xff] }
  0x64   : > { %1092 = vmatpush.bf16.msrb.mxu0 %v2225_v8  ;;  %v2269_v8 = vld [vmem:[#allocation8 + $0xf8] sm:$0xff] }
  0x65   : > { %1102 = vmatpush.bf16.msrb.mxu1 %v2237_v1  ;;  %v2243_v1 = vld [vmem:[#allocation8 + $0x28] sm:$0xff] }
  0x66   : > { %1507 = vmatpush.bf16.msrb.mxu3 %v2253_v6 }
  0x68   : > { %1093 = vmatpush.bf16.msrb.mxu0 %v2224_v12  ;;  %v2268_v12 = vld [vmem:[#allocation8 + $0xf0] sm:$0xff] }
  0x69   : > { %1103 = vmatpush.bf16.msrb.mxu1 %v2236_v5  ;;  %v2240_v5 = vld [vmem:[#allocation8 + $0x10] sm:$0xff] }
  0x6c   : > { %1094 = vmatpush.bf16.msrb.mxu0 %v2223_v16  ;;  %v2267_v16 = vld [vmem:[#allocation8 + $0xe8] sm:$0xff] }
  0x6d   : > { %1104 = vmatpush.bf16.msrb.mxu1 %v2235_v9  ;;  %v2239_v9 = vld [vmem:[#allocation8 + $0x8] sm:$0xff] }
  0x70   : > { %1095 = vmatpush.bf16.msrb.mxu0 %v2222_v19  ;;  %v2250_v19 = vld [vmem:[#allocation8 + $0x60] sm:$0xff] }
  0x71   : > { %1105 = vmatpush.bf16.msrb.mxu1 %v2234_v13  ;;  %v2238_v13 = vld [vmem:[#allocation8] sm:$0xff] }
  0x75   : > { %1106 = vmatpush.bf16.msrb.mxu1 %v2233_v17  ;;  %v2277_v17 = vld [vmem:[#allocation8 + $0x138] sm:$0xff] }
  0x79   : > { %1107 = vmatpush.bf16.msrb.mxu1 %v2232_v20  ;;  %v2257_v20 = vld [vmem:[#allocation8 + $0x98] sm:$0xff] }
  0x7d   : > { %1108 = vmatpush.bf16.msrb.mxu1 %v2231_v22  ;;  %v2276_v22 = vld [vmem:[#allocation8 + $0x130] sm:$0xff] }
  0x81   : > { %1109 = vmatpush.bf16.msrb.mxu1 %v2230_v26  ;;  %v2275_v26 = vld [vmem:[#allocation8 + $0x128] sm:$0xff] }
  0xc8   : > { %v589_v46 = vpop.permute.xlu0 %588 }
  0xc9   : > { %v607_v47 = vpop.permute.xlu1 %606  ;;  %v616_v48 = vsel %vm614_vm5, %v2808_v10, %v589_v46  ;;  %v2208_v10 = vld [vmem:[#allocation6 + $0x50] sm:$0xff] }
  0xca   : > { %1065 = vmatpush.bf16.msra.mxu2 %v2208_v10  ;;  %v2252_v10 = vld [vmem:[#allocation8 + $0x70] sm:$0xff] }
  0xcb   : > { %1508 = vmatpush.bf16.msrb.mxu3 %v2252_v10 }
  0xce   : > { %1066 = vmatpush.bf16.msra.mxu2 %v2207_v14  ;;  %v2251_v14 = vld [vmem:[#allocation8 + $0x68] sm:$0xff] }
  0xcf   : > { %1509 = vmatpush.bf16.msrb.mxu3 %v2251_v14 }
  0xd0   : > { %v595_v49 = vpop.permute.xlu0 %594 }
  0xd1   : > { %v619_v50 = vsel %vm617_vm6, %v616_v48, %v595_v49  ;;  %v613_v51 = vpop.permute.xlu1 %612 }
  0xd2   : > { %v622_v52 = vsel %vm620_vm7, %v619_v50, %v607_v47  ;;  %1067 = vmatpush.bf16.msra.mxu2 %v2206_v18 }
  0xd3   : > { %v625_v53 = vsel %vm623_vm8, %v622_v52, %v613_v51  ;;  %1510 = vmatpush.bf16.msrb.mxu3 %v2250_v19 }
  0xd4   : > { %1833 = vmatmul.msk.bf16.vlgmr.msra.gmra.mxu0 %vm646_vm9, %v625_v53 }
  0xd5   : > { %1521 = vmatpush.bf16.msra.mxu0 %v2261_v4 }
  0xd6   : > { %1493 = vmatpush.bf16.msrb.mxu2 %v2245_v63 }
  0xd9   : > { %1522 = vmatpush.bf16.msra.mxu0 %v2260_v7 }
  0xda   : > { %1494 = vmatpush.bf16.msrb.mxu2 %v2244_v0 }
  0xdd   : > { %1523 = vmatpush.bf16.msra.mxu0 %v2259_v11 }
  0xde   : > { %1495 = vmatpush.bf16.msrb.mxu2 %v2243_v1 }
  0xe1   : > { %1524 = vmatpush.bf16.msra.mxu0 %v2258_v15 }
  0xe2   : > { %1496 = vmatpush.bf16.msrb.mxu2 %v2242_v2 }
  0xe5   : > { %1525 = vmatpush.bf16.msra.mxu0 %v2257_v20 }
  0xe6   : > { %1497 = vmatpush.bf16.msrb.mxu2 %v2241_v3 }
  0xea   : > { %1498 = vmatpush.bf16.msrb.mxu2 %v2240_v5 }
  0xee   : > { %1499 = vmatpush.bf16.msrb.mxu2 %v2239_v9 }
  0xf2   : > { %1500 = vmatpush.bf16.msrb.mxu2 %v2238_v13 }
 0x151   : > { %v662_v23 = vpop.f32.mrf.mxu0 }
 0x152   : > { %v671_v24 = vmul.f32 %v2377_v21, %v662_v23  ;;  %v2249_v23 = vld [vmem:[#allocation8 + $0x58] sm:$0xff] }
 0x153   : > { %1511 = vmatpush.bf16.msrb.mxu3 %v2249_v23 }
 0x154   : > { %v677_v27 = vadd.f32 %v2378_v25, %v671_v24  ;;  %v2256_v24 = vld [vmem:[#allocation8 + $0x90] sm:$0xff] }
 0x155   : > { %1526 = vmatpush.bf16.msra.mxu0 %v2256_v24 }
 0x156   : > { %v679_v29 = vmax.f32 %v677_v27, 0.0  ;;  %v2248_v27 = vld [vmem:[#allocation8 + $0x50] sm:$0xff] }
 0x157   : > { %1512 = vmatpush.bf16.msrb.mxu3 %v2248_v27 }
 0x158   : > { %v681_v32 = vpack.c.bf16 %v679_v29, %v679_v29 }
 0x159   : > { %v664_v28 = vpop.f32.mrf.mxu0 }
 0x15a   : > { %v672_v30 = vmul.f32 %v2377_v21, %v664_v28  ;;  %v685_v35 = vunpack.c.l.b16 %v681_v32  ;;  %v2266_v21 = vld [vmem:[#allocation8 + $0xe0] sm:$0xff]  ;;  %v2255_v28 = vld [vmem:[#allocation8 + $0x88] sm:$0xff] }
 0x15b   : > { %1527 = vmatpush.bf16.msra.mxu0 %v2255_v28  ;;  %v2247_v32 = vld [vmem:[#allocation8 + $0x48] sm:$0xff] }
 0x15c   : > { %v678_v31 = vadd.f32 %v2378_v25, %v672_v30  ;;  %v2265_v25 = vld [vmem:[#allocation8 + $0xd8] sm:$0xff]  ;;  %v2264_v30 = vld [vmem:[#allocation8 + $0xd0] sm:$0xff]  ;;  %1513 = vmatpush.bf16.msrb.mxu3 %v2247_v32 }
 0x15d   : > { %v2283_v32 = vld [vmem:[%s2934_s10 + $0x28] sm:$0xff] }
 0x15e   : > { %v680_v33 = vmax.f32 %v678_v31, 0.0  ;;  %v2274_v31 = vld [vmem:[#allocation8 + $0x120] sm:$0xff] }
 0x160   : > { %v682_v34 = vpack.c.bf16 %v680_v33, %v680_v33  ;;  %v2254_v33 = vld [vmem:[#allocation8 + $0x80] sm:$0xff] }
 0x161   : > { %1528 = vmatpush.bf16.msra.mxu0 %v2254_v33  ;;  %v2282_v33 = vld [vmem:[%s2934_s10 + $0x20] sm:$0xff] }
 0x162   : > { %v686_v36 = vunpack.c.l.b16 %v682_v34  ;;  %v2263_v34 = vld [vmem:[#allocation8 + $0xc8] sm:$0xff] }
 0x164   : > { %v687_v37 = vpack.c.b16 %v686_v36, %v685_v35 }
 0x166   : > { %v688_v39 = vrot.slane %v687_v37, 7  ;;  %v2273_v37 = vld [vmem:[#allocation8 + $0x118] sm:$0xff] }
 0x168   : > { %v692_v40 = vsel %vm689_vm10, 0, %v688_v39  ;;  %v694_v41 = vsel %vm689_vm10, %v688_v39, 0  ;;  %1995 = vmatmul.msk.bf16.vlgmr.msra.gmra.mxu1 %vm2827_vm11, %v688_v39 }
 0x169   : > { %v708_v42 = vrot.slane %v692_v40, 1  ;;  %v709_v43 = vrot.slane %v694_v41, 1  ;;  %v695_v44 = vshrl.u32 %v692_v40, 16  ;;  %v697_v45 = vshll.u32 %v692_v40, 16  ;;  %1535 = vmatpush.bf16.msra.mxu1 %v2269_v8 }
 0x16a   : > { %v701_v46 = vshll.u32 %v694_v41, 16  ;;  %v715_v47 = vshrl.u32 %v694_v41, 16  ;;  %v722_v60 = vrot.slane %v692_v40, 2  ;;  %v723_v61 = vrot.slane %v694_v41, 2 }
 0x16b   : > { %v710_v48 = vsel %vm590_vm2, %v708_v42, %v709_v43  ;;  %v699_v49 = vrot.slane %v697_v45, 1  ;;  %v712_v50 = vrot.slane %v695_v44, 1  ;;  %v713_v51 = vrot.slane %v697_v45, 2  ;;  %v2246_v42 = vld [vmem:[#allocation8 + $0x40] sm:$0xff] }
 0x16c   : > { %1082 = vmatmul.bf16.vlgmr.msra.gmra.mxu3 %v710_v48  ;;  %v717_v52 = vrot.slane %v715_v47, 1  ;;  %v718_v53 = vrot.slane %v701_v46, 2  ;;  %v703_v55 = vrot.slane %v701_v46, 1  ;;  %v724_v62 = vsel %vm608_vm3, %v722_v60, %v723_v61  ;;  %v2262_v43 = vld [vmem:[#allocation8 + $0xc0] sm:$0xff]  ;;  %v2379_v47 = vld [vmem:[%s2929_s5] ss:$0 sm:$0xff] }
 0x16d   : > { %v700_v54 = vor.u32 %v699_v49, %v695_v44  ;;  %v714_v56 = vor.u32 %v713_v51, %v712_v50  ;;  %1536 = vmatpush.bf16.msra.mxu1 %v2268_v12  ;;  %v2272_v44 = vld [vmem:[#allocation8 + $0x110] sm:$0xff]  ;;  %1514 = vmatpush.bf16.msrb.mxu3 %v2246_v42  ;;  %v2271_v49 = vld [vmem:[#allocation8 + $0x108] sm:$0xff] }
 0x16e   : > { %v719_v57 = vor.u32 %v718_v53, %v717_v52  ;;  %v2380_v52 = vld [vmem:[%s2930_s6] ss:$0 sm:$0xff] }
 0x16f   : > { %v704_v58 = vsel %vm575_vm0, %v700_v54, %v703_v55  ;;  %v2270_v55 = vld [vmem:[#allocation8 + $0x100] sm:$0xff] }
 0x170   : > { %1068 = vmatmul.bf16.vlgmr.msra.gmra.mxu2 %v704_v58  ;;  %v720_v59 = vsel %vm596_vm1, %v714_v56, %v719_v57 }
 0x171   : > { %1096 = vmatmul.bf16.vlgmr.msrb.gmra.mxu0 %v720_v59  ;;  %1537 = vmatpush.bf16.msra.mxu1 %v2267_v16 }
 0x172   : > { %1549 = vmatpush.bf16.msra.mxu2 %v2277_v17 }
 0x175   : > { %1538 = vmatpush.bf16.msra.mxu1 %v2266_v21 }
 0x176   : > { %1550 = vmatpush.bf16.msra.mxu2 %v2276_v22 }
 0x178   : > { %1110 = vmatmul.bf16.vlgmr.msrb.gmra.mxu1 %v724_v62 }
 0x179   : > { %1539 = vmatpush.bf16.msra.mxu1 %v2265_v25 }
 0x17a   : > { %1551 = vmatpush.bf16.msra.mxu2 %v2275_v26 }
 0x17d   : > { %1540 = vmatpush.bf16.msra.mxu1 %v2264_v30  ;;  %v2285_v30 = vld [vmem:[%s2934_s10 + $0x38] sm:$0xff] }
 0x17e   : > { %1552 = vmatpush.bf16.msra.mxu2 %v2274_v31  ;;  %1646 = vmatpush.bf16.msra.mxu3 %v2285_v30  ;;  %v2284_v31 = vld [vmem:[%s2934_s10 + $0x30] sm:$0xff] }
 0x181   : > { %1541 = vmatpush.bf16.msra.mxu1 %v2263_v34  ;;  %v2281_v34 = vld [vmem:[%s2934_s10 + $0x18] sm:$0xff] }
 0x182   : > { %1553 = vmatpush.bf16.msra.mxu2 %v2273_v37  ;;  %1647 = vmatpush.bf16.msra.mxu3 %v2284_v31  ;;  %v2278_v37 = vld [vmem:[%s2934_s10] sm:$0xff] }
 0x185   : > { %1542 = vmatpush.bf16.msra.mxu1 %v2262_v43 }
 0x186   : > { %1554 = vmatpush.bf16.msra.mxu2 %v2272_v44  ;;  %1648 = vmatpush.bf16.msra.mxu3 %v2283_v32 }
 0x18a   : > { %1555 = vmatpush.bf16.msra.mxu2 %v2271_v49  ;;  %1649 = vmatpush.bf16.msra.mxu3 %v2282_v33 }
 0x18e   : > { %1556 = vmatpush.bf16.msra.mxu2 %v2270_v55  ;;  %1650 = vmatpush.bf16.msra.mxu3 %v2281_v34  ;;  %v2381_v55 = vld [vmem:[%s2932_s8] ss:$0 sm:$0xff] }
 0x1e5   : > { %v1055_v18 = vpop.f32.mrf.mxu1 }
 0x1ed   : > { %v1057_v29 = vpop.f32.mrf.mxu1 }
 0x1ee   : > { %v1097_v40 = vpop.f32.mrf.mxu0 }
 0x1ef   : > { %v1083_v35 = vpop.f32.mrf.mxu3 }
 0x1f3   : > { %v1069_v36 = vpop.f32.mrf.mxu2 }
 0x1f4   : > { %v1070_v39 = vadd.f32 %v1069_v36, %v1055_v18  ;;  %v2279_v36 = vld [vmem:[%s2934_s10 + $0x8] sm:$0xff] }
 0x1f5   : > { %v1111_v45 = vpop.f32.mrf.mxu1 }
 0x1f6   : > { %v1084_v41 = vadd.f32 %v1083_v35, %v1070_v39  ;;  %v1099_v57 = vpop.f32.mrf.mxu0  ;;  %v2280_v35 = vld [vmem:[%s2934_s10 + $0x10] sm:$0xff] }
 0x1f7   : > { %v1085_v54 = vpop.f32.mrf.mxu3  ;;  %1651 = vmatpush.bf16.msra.mxu3 %v2280_v35 }
 0x1f8   : > { %v1098_v46 = vadd.f32 %v1097_v40, %v1084_v41  ;;  %v2383_v40 = vld [vmem:[#allocation2] ss:$0 sm:$0xff]  ;;  %v2592_v41 = vmov 0  }
 0x1f9   : > { %2375 = vset.pattern.permute.xlu2 %v2592_v41  ;;  %2376 = vset.pattern.permute.xlu0 %v2592_v41 }
 0x1fa   : > { %v1112_v48 = vadd.f32 %v1111_v45, %v1098_v46  ;;  %1668 = vperm.xlu2 %2375, %v2383_v40  }
 0x1fb   : > { %v1071_v50 = vpop.f32.mrf.mxu2  ;;  %1652 = vmatpush.bf16.msra.mxu3 %v2279_v36 }
 0x1fc   : > { %v1120_v51 = vmul.f32 %v2379_v47, %v1112_v48  ;;  %v1072_v53 = vadd.f32 %v1071_v50, %v1057_v29 }
 0x1fd   : > { %v1113_v60 = vpop.f32.mrf.mxu1 }
 0x1fe   : > { %v1086_v56 = vadd.f32 %v1085_v54, %v1072_v53  ;;  %v1126_v58 = vadd.f32 %v2380_v52, %v1120_v51 }
 0x1ff   : > { %1653 = vmatpush.bf16.msra.mxu3 %v2278_v37 }
 0x200   : > { %v1100_v59 = vadd.f32 %v1099_v57, %v1086_v56  ;;  %v1128_v62 = vmax.f32 %v1126_v58, 0.0  ;;  %v2382_v58 = vld [vmem:[%s2933_s9] ss:$0 sm:$0xff] }
 0x202   : > { %v1114_v61 = vadd.f32 %v1113_v60, %v1100_v59  ;;  %v1130_v1 = vpack.c.bf16 %v1128_v62, %v1128_v62 }
 0x204   : > { %v1121_v63 = vmul.f32 %v2379_v47, %v1114_v61  ;;  %v1134_v4 = vunpack.c.l.b16 %v1130_v1 }
 0x206   : > { %v1127_v0 = vadd.f32 %v2380_v52, %v1121_v63 }
 0x208   : > { %v1129_v2 = vmax.f32 %v1127_v0, 0.0 }
 0x20a   : > { %v1131_v3 = vpack.c.bf16 %v1129_v2, %v1129_v2 }
 0x20c   : > { %v1135_v5 = vunpack.c.l.b16 %v1131_v3 }
 0x20e   : > { %v1136_v6 = vpack.c.b16 %v1135_v5, %v1134_v4  ;;  %v2384_v4 = vld [vmem:[%s2935_s11] ss:$0 sm:$0xff]  ;;  %v1663_v5 = vld [vmem:[%s2797_s15] sm:$0xff] }
 0x210   : > { %v1137_v7 = vrot.slane %v1136_v6, 7 }
 0x212   : > { %2157 = vmatmul.msk.bf16.vlgmr.msrb.gmra.mxu2 %vm2827_vm11, %v1137_v7  ;;  %v1139_v8 = vsel %vm689_vm10, 0, %v1137_v7  ;;  %v1141_v9 = vsel %vm689_vm10, %v1137_v7, 0 }
 0x213   : > { %v1155_v10 = vrot.slane %v1139_v8, 1  ;;  %v1156_v11 = vrot.slane %v1141_v9, 1  ;;  %v1142_v12 = vshrl.u32 %v1139_v8, 16  ;;  %v1144_v13 = vshll.u32 %v1139_v8, 16 }
 0x214   : > { %v1148_v14 = vshll.u32 %v1141_v9, 16  ;;  %v1162_v15 = vshrl.u32 %v1141_v9, 16  ;;  %v1169_v27 = vrot.slane %v1139_v8, 2  ;;  %v1170_v28 = vrot.slane %v1141_v9, 2 }
 0x215   : > { %v1157_v16 = vsel %vm590_vm2, %v1155_v10, %v1156_v11  ;;  %v1146_v17 = vrot.slane %v1144_v13, 1  ;;  %v1159_v18 = vrot.slane %v1142_v12, 1  ;;  %v1160_v19 = vrot.slane %v1144_v13, 2 }
 0x216   : > { %1529 = vmatmul.bf16.vlgmr.msra.gmra.mxu0 %v1157_v16  ;;  %v1164_v20 = vrot.slane %v1162_v15, 1  ;;  %v1165_v21 = vrot.slane %v1148_v14, 2  ;;  %v1150_v22 = vrot.slane %v1148_v14, 1  ;;  %v1171_v29 = vsel %vm608_vm3, %v1169_v27, %v1170_v28 }
 0x217   : > { %v1147_v38 = vor.u32 %v1146_v17, %v1142_v12  ;;  %v1161_v23 = vor.u32 %v1160_v19, %v1159_v18  ;;  %v1664_v12 = vld [vmem:[%s2797_s15 + $0x8] sm:$0xff]  ;;  %s2519_s15 = sshra.s32 %s1693_s24, 4  ;;  %s2520_s15 = int_to_ptr.hbm [resolvable:$true] %s2519_s15 }
 0x218   : > { %v1166_v24 = vor.u32 %v1165_v21, %v1164_v20  ;;  %s2521_s7 = scalar_lea.hbm %s2520_s15, 16  ;;  %p2526_p9 = scmp.lt.s32.totalorder %s2520_s15, %s2938_s14 }
 0x219   : > { %v1151_v25 = vsel %vm575_vm0, %v1147_v38, %v1150_v22  ;;  %p2522_p4 = scmp.ne.s32.totalorder %s2520_s15, %s2521_s7  ;;  %p2527_p2 = scmp.lt.s32.totalorder %s2525_s19, %s2521_s7 }
 0x21a   : > { %1515 = vmatmul.bf16.vlgmr.msrb.gmra.mxu3 %v1151_v25  ;;  %v1167_v26 = vsel %vm596_vm1, %v1161_v23, %v1166_v24 }
 0x21b   : > { %1543 = vmatmul.bf16.vlgmr.msra.gmra.mxu1 %v1167_v26  ;;  %p2523_p8 = pnand %p2522_p4, %p2755_p7  ;;  %p2528_p11 = por %p2527_p2, %p2526_p9 }
 0x21d   : > { %p2524_p10 = pneg %p2523_p8 }
 0x21f   : > { %p2529_p12 = pnand %p2528_p11, %p2524_p10 }
 0x222   : > { %1557 = vmatmul.bf16.vlgmr.msra.gmra.mxu2 %v1171_v29 }
 0x254   : > { %v1669_v6 = vpop.permute.xlu2 %1668 }
 0x255   : > { %v1671_v9 = vmul.f32 %v1669_v6, %v1663_v5  ;;  %v1672_v14 = vmul.f32 %v1669_v6, %v1664_v12 }
 0x293   : > { %v1530_v42 = vpop.f32.mrf.mxu0 }
 0x295   : > { %v1502_v39 = vpop.f32.mrf.mxu2 }
 0x298   : > { %v1544_v46 = vpop.f32.mrf.mxu1 }
 0x29b   : > { %v1532_v52 = vpop.f32.mrf.mxu0 }
 0x29d   : > { %v1504_v43 = vpop.f32.mrf.mxu2  ;;  %v1516_v44 = vpop.f32.mrf.mxu3 }
 0x29e   : > { %v1517_v45 = vadd.f32 %v1516_v44, %v1502_v39 }
 0x2a0   : > { %v1531_v47 = vadd.f32 %v1530_v42, %v1517_v45  ;;  %v1546_v56 = vpop.f32.mrf.mxu1 }
 0x2a2   : > { %v1545_v51 = vadd.f32 %v1544_v46, %v1531_v47 }
 0x2a5   : > { %v1518_v48 = vpop.f32.mrf.mxu3  ;;  %v1558_v49 = vpop.f32.mrf.mxu2 }
 0x2a6   : > { %v1519_v50 = vadd.f32 %v1518_v48, %v1504_v43  ;;  %v1559_v54 = vadd.f32 %v1558_v49, %v1545_v51 }
 0x2a8   : > { %v1533_v53 = vadd.f32 %v1532_v52, %v1519_v50  ;;  %v1567_v57 = vmul.f32 %v2381_v55, %v1559_v54 }
 0x2aa   : > { %v1547_v59 = vadd.f32 %v1546_v56, %v1533_v53  ;;  %v1573_v62 = vadd.f32 %v2382_v58, %v1567_v57 }
 0x2ac   : > { %v1575_v1 = vmax.f32 %v1573_v62, 0.0 }
 0x2ad   : > { %v1560_v60 = vpop.f32.mrf.mxu2 }
 0x2ae   : > { %v1561_v61 = vadd.f32 %v1560_v60, %v1547_v59 }
 0x2b0   : > { %v1568_v63 = vmul.f32 %v2381_v55, %v1561_v61 }
 0x2b2   : > { %v1574_v0 = vadd.f32 %v2382_v58, %v1568_v63 }
 0x2b4   : > { %v1576_v2 = vmax.f32 %v1574_v0, 0.0 }
 0x2b6   : > { %v1577_v3 = vpack.c.bf16 %v1576_v2, %v1575_v1 }
 0x2b8   : > { %1654 = vmatmul.bf16.vlgmr.msra.gmra.mxu3 %v1577_v3 }
 0x33b   : > { %v1655_v7 = vpop.f32.mrf.mxu3 }
 0x33c   : > { %v1656_v8 = vadd.f32 %v2384_v4, %v1655_v7 }
 0x33e   : > { %v1660_v10 = vmax.f32 %v1656_v8, 0.0 }
 0x340   : > { %v1673_v11 = vadd.f32 %v1671_v9, %v1660_v10 }
 0x342   : > { %1675 = vst [vmem:[%s554_s1] sm:$0xff] %v1673_v11 }
 0x343   : > { %v1657_v13 = vpop.f32.mrf.mxu3 }
 0x344   : > { %v1658_v15 = vadd.f32 %v2384_v4, %v1657_v13 }
 0x346   : > { %v1661_v16 = vmax.f32 %v1658_v15, 0.0 }
 0x348   : > { %v1674_v17 = vadd.f32 %v1672_v14, %v1661_v16 }
 0x34a   : > { %1676 = vst [vmem:[%s554_s1 + $0x8] sm:$0xff] %v1674_v17 }
 0x34b   : > { %2532 = shalt.err (!%p2529_p12)
}
 0x34c   : > { %s2593_s17 = smov 128  }
 0x34d   : > { %2302 = dma.vmem_to_hbm [thread:$0]  (%p2755_p7), %s1691_s22, 256, %s1693_s24, %s1678_s12, %s2593_s17, %s2593_s17, %s2588_s20  }
 0x34e PF: > { %s2960_s1 = sld [smem:[#allocation16_spill]]  ;;  %p2962_p13 = scmp.ge.s32.totalorder %s2579_s18, 2 }
 0x350   : > { %p2319_p0 = pnand %p2962_p13, %p2707_p6 }
 0x352   : > { %p2320_p3 = pneg %p2319_p0 }
 0x354   : > { %s1707_s21 = sand.u32 1, %s2960_s1  }
 0x355   : > { %s1708_s29 = scalar_lea.sflag [#allocation5], %s1707_s21 }
 0x356   : > { %2562 = dma.done.wait (%p2320_p3), %s1708_s29, 256  }
 0x357   : > { %2564 = vsyncadd (%p2320_p3), %s1708_s29, 4294967040  ;;  %s2963_s7 = sld [smem:[#allocation17_spill]]  ;;  %p31_p5 = scmp.ge.s32.totalorder %s2739_s25, 4  }
 0x358   : > { %s2964_s17 = sld [smem:[#allocation19_spill]]  ;;  %s2965_s15 = smov %s2571_s16 }
 0x359   : > { %s2967_s18 = smov %s2739_s25  ;;  %33 = sbr.rel (!%p31_p5) target bundleno = 11 (0xb), region = 137 }
 0x35d   : > { %s2966_s16 = smov %s2963_s7 }
 0x35e   :  { %1714 = vsyncpa [#allocation4], 1 }
 0x35f   :  { %1716 = vsyncpa [#allocation4 + $0x1], 1 }
 0x360   :  { %1717 = vsyncpa [#allocation7], 1 }
 0x361   :  { %1718 = vsyncpa [#allocation10], 1 }
 0x362   :  { %1720 = vsyncpa [#allocation10 + $0x1], 1 }
 0x363   :  { %1721 = vsyncpa [#allocation5], 1 }
 0x364   :  { %1723 = vsyncpa [#allocation5 + $0x1], 1 }

</bundles_post_ra>
